<compile_context>
chip_gen: v7x
topology: tpu7x:2x2x1
jax: 0.10.0
libtpu: 0.0.40
codegen_flags: <defaults>
</compile_context>

<pallas_src>
import functools

import jax
import jax.numpy as jnp
from jax import lax
from jax.experimental import pallas as pl
from jax.experimental.pallas import tpu as pltpu


def _round_up(x: int, m: int) -> int:
    return ((x + m - 1) // m) * m


def _make_center_loss_kernel(*, tb: int, b: int, d: int, d_pad: int,
                             num_classes: int):
    """Builds the per-tile kernel.

    Kernel args (PrefetchScalarGridSpec, num_scalar_prefetch=1):
        labels_ref : SMEM int32[b_pad]          (scalar-prefetched labels)
        x_ref      : VMEM f32[tb, d_pad]        (one tile of input rows)
        c_ref      : VMEM f32[num_classes, d_pad] (resident centers table)
        out_ref    : VMEM f32[1, d_pad]         (per-lane partial sums, tile i)
    """
    need_row_mask = (b % tb) != 0      # batch padded up to a multiple of tb
    need_col_mask = (d_pad != d)       # feature dim padded up to 128 lanes

    def kernel(labels_ref, x_ref, c_ref, out_ref):
        i = pl.program_id(0)
        base_row = i * tb

        # Hoisted loop-invariant lane-validity mask (padded feature columns
        # would otherwise contribute clamp(0, 1e-12, 1e12) = 1e-12 each).
        if need_col_mask:
            col_valid = lax.broadcasted_iota(jnp.int32, (1, d_pad), 1) < d
        else:
            col_valid = None

        def body(r, acc):
            # Gather this row's center via the SMEM-prefetched label.
            lbl = labels_ref[base_row + r]
            lbl = jnp.clip(lbl, 0, num_classes - 1)   # guard untrusted labels
            c_row = c_ref[pl.ds(lbl, 1), :]           # (1, d_pad) from VMEM
            x_row = x_ref[pl.ds(r, 1), :].astype(jnp.float32)

            diff = x_row - c_row
            sq = jnp.clip(diff * diff, 1e-12, 1e12)

            if need_col_mask:
                sq = jnp.where(col_valid, sq, 0.0)
            if need_row_mask:
                sq = jnp.where(base_row + r < b, sq, 0.0)

            # Lane-wide accumulation: pure VPU adds, no cross-lane reduce
            # inside the loop.
            return acc + sq

        acc0 = jnp.zeros((1, d_pad), dtype=jnp.float32)
        acc = lax.fori_loop(0, tb, body, acc0, unroll=8)

        # Lane-dense (1, d_pad) store; cross-lane reduction is deferred to the
        # (tiny) host-side jnp.sum over the partials array.
        out_ref[...] = acc

    return kernel


@functools.partial(jax.jit, static_argnames=("size_average",))
def center_loss(inputs, labels, centers, size_average: bool = True):
    """Pallas forward of MyCenterLoss. Returns a scalar float32 loss."""
    B, D = inputs.shape
    num_classes, d_c = centers.shape
    assert d_c == D, f"centers dim {d_c} != inputs dim {D}"

    inputs = inputs.astype(jnp.float32)
    centers = centers.astype(jnp.float32)
    labels = labels.astype(jnp.int32)

    # --- padding / tiling choices -------------------------------------------
    d_pad = _round_up(D, 128)                 # lane-dense feature dim
    tb = min(256, _round_up(B, 8))            # rows per grid step (mult of 8)
    b_pad = _round_up(B, tb)
    num_tiles = b_pad // tb

    if d_pad != D:
        inputs = jnp.pad(inputs, ((0, 0), (0, d_pad - D)))
        centers = jnp.pad(centers, ((0, 0), (0, d_pad - D)))
    if b_pad != B:
        inputs = jnp.pad(inputs, ((0, b_pad - B), (0, 0)))
        labels = jnp.pad(labels, ((0, b_pad - B),))

    kernel = _make_center_loss_kernel(tb=tb, b=B, d=D, d_pad=d_pad,
                                      num_classes=num_classes)

    # --- VMEM budget: resident centers + double-buffered input tiles --------
    vmem_bytes = 4 * (num_classes * d_pad          # resident centers
                      + 2 * tb * d_pad             # double-buffered x tiles
                      + 2 * d_pad)                 # output blocks
    # Raise the scoped-VMEM default (16 MiB on v5e) but stay well under the
    # 64 MiB physical VMEM of v7x.
    vmem_limit = int(min(max(2 * vmem_bytes, 32 * 1024 * 1024),
                         56 * 1024 * 1024))

    partials = pl.pallas_call(
        kernel,
        out_shape=jax.ShapeDtypeStruct((num_tiles, d_pad), jnp.float32),
        grid_spec=pltpu.PrefetchScalarGridSpec(
            num_scalar_prefetch=1,                 # labels -> SMEM
            grid=(num_tiles,),
            in_specs=[
                # One (tb, d_pad) tile of input rows per grid step.
                pl.BlockSpec((tb, d_pad), lambda i, labels: (i, 0)),
                # Whole centers table, VMEM-resident (constant block index).
                pl.BlockSpec((num_classes, d_pad), lambda i, labels: (0, 0)),
            ],
            # Lane-dense per-tile partial sums; disjoint per step.
            out_specs=pl.BlockSpec((1, d_pad), lambda i, labels: (i, 0)),
        ),
        compiler_params=pltpu.CompilerParams(
            dimension_semantics=("parallel",),     # tiles are independent
            vmem_limit_bytes=vmem_limit,
        ),
    )(labels, inputs, centers)

    denom = jnp.float32(B) if size_average else jnp.float32(1.0)
    return jnp.sum(partials) / denom


class MyCenterLossPallas:
    """JAX/Pallas mirror of the PyTorch MyCenterLoss module (forward only)."""

    def __init__(self, num_classes=751, feat_dim=2048, size_average=True):
        self.feat_dim = feat_dim
        self.size_average = size_average
        # Deterministic init, same as nn.Parameter(torch.ones(...)).
        self.centers = jnp.ones((num_classes, feat_dim), dtype=jnp.float32)

    def __call__(self, inputs, labels):
        assert inputs.shape[1] == self.feat_dim, (
            f"inputs`s dim{inputs.shape[1]} should be equal to {self.feat_dim}")
        return center_loss(inputs, labels, self.centers,
                           size_average=self.size_average)


if __name__ == "__main__":
    # Small, TPU-friendly shapes consistent with the module's (bs, feat_dim) API.
    num_classes, feat_dim, batch = 16, 256, 8

    key = jax.random.PRNGKey(0)
    k_x, k_l, k_c = jax.random.split(key, 3)
    inputs = jax.random.normal(k_x, (batch, feat_dim), dtype=jnp.float32)
    labels = jax.random.randint(k_l, (batch,), 0, num_classes, dtype=jnp.int32)

    module = MyCenterLossPallas(num_classes=num_classes, feat_dim=feat_dim,
                                size_average=True)

    loss = jax.block_until_ready(module(inputs, labels))

    # Pure-JAX reference check (same semantics as the PyTorch forward).
    diff = inputs - module.centers[labels]
    ref = jnp.sum(jnp.clip(diff * diff, 1e-12, 1e12)) / batch
    assert jnp.allclose(loss, ref, rtol=1e-5, atol=1e-5), (loss, ref)

    # Ragged case: exercises both batch-row and feature-lane padding paths.
    nc2, d2, b2 = 5, 200, 6
    centers2 = jax.random.normal(k_c, (nc2, d2), dtype=jnp.float32)
    x2 = jax.random.normal(k_x, (b2, d2), dtype=jnp.float32)
    l2 = jax.random.randint(k_l, (b2,), 0, nc2, dtype=jnp.int32)
    loss2 = jax.block_until_ready(center_loss(x2, l2, centers2,
                                              size_average=True))
    diff2 = x2 - centers2[l2]
    ref2 = jnp.sum(jnp.clip(diff2 * diff2, 1e-12, 1e12)) / b2
    assert jnp.allclose(loss2, ref2, rtol=1e-5, atol=1e-5), (loss2, ref2)

    print("KERNEL_OK")
</pallas_src>

<mosaic_0001>
module attributes {stable_mosaic.version = 11 : i64} {
  func.func @kernel(%arg0: i32, %arg1: memref<8xi32, #tpu.memory_space<smem>>, %arg2: memref<8x256xf32, #tpu.memory_space<vmem>>, %arg3: memref<16x256xf32, #tpu.memory_space<vmem>>, %arg4: memref<1x256xf32, #tpu.memory_space<vmem>>) attributes {dimension_semantics = [#tpu.dimension_semantics<parallel>], iteration_bounds = array<i64: 1>, scalar_prefetch = 1 : i64, scratch_operands = 0 : i64, tpu.core_type = #tpu.core_type<tc>, window_params = [{transform_indices = @transform_0, window_bounds = array<i64: 8, 256>}, {pipeline_mode = #tpu.pipeline_mode<synchronous>, transform_indices = @transform_1, window_bounds = array<i64: 16, 256>}, {transform_indices = @transform_2, window_bounds = array<i64: 1, 256>}]} {
    %c8_i32 = arith.constant 8 : i32
    %0 = arith.muli %arg0, %c8_i32 : i32
    %cst = arith.constant 0.000000e+00 : f32
    %1 = vector.broadcast %cst : f32 to vector<1x256xf32>
    %c0_i32 = arith.constant 0 : i32
    %2 = arith.addi %0, %c0_i32 : i32
    %3 = arith.index_cast %2 : i32 to index
    %4 = memref.load %arg1[%3] : memref<8xi32, #tpu.memory_space<smem>>
    %c0_i32_0 = arith.constant 0 : i32
    %c15_i32 = arith.constant 15 : i32
    %5 = arith.maxsi %c0_i32_0, %4 : i32
    %6 = arith.minsi %c15_i32, %5 : i32
    %7 = arith.index_cast %6 : i32 to index
    %c0 = arith.constant 0 : index
    %8 = vector.load %arg3[%7, %c0] : memref<16x256xf32, #tpu.memory_space<vmem>>, vector<1x256xf32>
    %9 = arith.index_cast %c0_i32 : i32 to index
    %c0_1 = arith.constant 0 : index
    %10 = vector.load %arg2[%9, %c0_1] : memref<8x256xf32, #tpu.memory_space<vmem>>, vector<1x256xf32>
    %11 = arith.subf %10, %8 : vector<1x256xf32>
    %12 = arith.mulf %11, %11 : vector<1x256xf32>
    %cst_2 = arith.constant 9.99999996E-13 : f32
    %cst_3 = arith.constant 9.99999995E+11 : f32
    %13 = vector.broadcast %cst_2 : f32 to vector<1x256xf32>
    %14 = arith.maximumf %13, %12 : vector<1x256xf32>
    %15 = vector.broadcast %cst_3 : f32 to vector<1x256xf32>
    %16 = arith.minimumf %15, %14 : vector<1x256xf32>
    %17 = arith.addf %1, %16 : vector<1x256xf32>
    %c1_i32 = arith.constant 1 : i32
    %18 = arith.addi %0, %c1_i32 : i32
    %19 = arith.index_cast %18 : i32 to index
    %20 = memref.load %arg1[%19] : memref<8xi32, #tpu.memory_space<smem>>
    %c0_i32_4 = arith.constant 0 : i32
    %c15_i32_5 = arith.constant 15 : i32
    %21 = arith.maxsi %c0_i32_4, %20 : i32
    %22 = arith.minsi %c15_i32_5, %21 : i32
    %23 = arith.index_cast %22 : i32 to index
    %c0_6 = arith.constant 0 : index
    %24 = vector.load %arg3[%23, %c0_6] : memref<16x256xf32, #tpu.memory_space<vmem>>, vector<1x256xf32>
    %25 = arith.index_cast %c1_i32 : i32 to index
    %c0_7 = arith.constant 0 : index
    %26 = vector.load %arg2[%25, %c0_7] : memref<8x256xf32, #tpu.memory_space<vmem>>, vector<1x256xf32>
    %27 = arith.subf %26, %24 : vector<1x256xf32>
    %28 = arith.mulf %27, %27 : vector<1x256xf32>
    %cst_8 = arith.constant 9.99999996E-13 : f32
    %cst_9 = arith.constant 9.99999995E+11 : f32
    %29 = vector.broadcast %cst_8 : f32 to vector<1x256xf32>
    %30 = arith.maximumf %29, %28 : vector<1x256xf32>
    %31 = vector.broadcast %cst_9 : f32 to vector<1x256xf32>
    %32 = arith.minimumf %31, %30 : vector<1x256xf32>
    %33 = arith.addf %17, %32 : vector<1x256xf32>
    %c2_i32 = arith.constant 2 : i32
    %34 = arith.addi %0, %c2_i32 : i32
    %35 = arith.index_cast %34 : i32 to index
    %36 = memref.load %arg1[%35] : memref<8xi32, #tpu.memory_space<smem>>
    %c0_i32_10 = arith.constant 0 : i32
    %c15_i32_11 = arith.constant 15 : i32
    %37 = arith.maxsi %c0_i32_10, %36 : i32
    %38 = arith.minsi %c15_i32_11, %37 : i32
    %39 = arith.index_cast %38 : i32 to index
    %c0_12 = arith.constant 0 : index
    %40 = vector.load %arg3[%39, %c0_12] : memref<16x256xf32, #tpu.memory_space<vmem>>, vector<1x256xf32>
    %41 = arith.index_cast %c2_i32 : i32 to index
    %c0_13 = arith.constant 0 : index
    %42 = vector.load %arg2[%41, %c0_13] : memref<8x256xf32, #tpu.memory_space<vmem>>, vector<1x256xf32>
    %43 = arith.subf %42, %40 : vector<1x256xf32>
    %44 = arith.mulf %43, %43 : vector<1x256xf32>
    %cst_14 = arith.constant 9.99999996E-13 : f32
    %cst_15 = arith.constant 9.99999995E+11 : f32
    %45 = vector.broadcast %cst_14 : f32 to vector<1x256xf32>
    %46 = arith.maximumf %45, %44 : vector<1x256xf32>
    %47 = vector.broadcast %cst_15 : f32 to vector<1x256xf32>
    %48 = arith.minimumf %47, %46 : vector<1x256xf32>
    %49 = arith.addf %33, %48 : vector<1x256xf32>
    %c3_i32 = arith.constant 3 : i32
    %50 = arith.addi %0, %c3_i32 : i32
    %51 = arith.index_cast %50 : i32 to index
    %52 = memref.load %arg1[%51] : memref<8xi32, #tpu.memory_space<smem>>
    %c0_i32_16 = arith.constant 0 : i32
    %c15_i32_17 = arith.constant 15 : i32
    %53 = arith.maxsi %c0_i32_16, %52 : i32
    %54 = arith.minsi %c15_i32_17, %53 : i32
    %55 = arith.index_cast %54 : i32 to index
    %c0_18 = arith.constant 0 : index
    %56 = vector.load %arg3[%55, %c0_18] : memref<16x256xf32, #tpu.memory_space<vmem>>, vector<1x256xf32>
    %57 = arith.index_cast %c3_i32 : i32 to index
    %c0_19 = arith.constant 0 : index
    %58 = vector.load %arg2[%57, %c0_19] : memref<8x256xf32, #tpu.memory_space<vmem>>, vector<1x256xf32>
    %59 = arith.subf %58, %56 : vector<1x256xf32>
    %60 = arith.mulf %59, %59 : vector<1x256xf32>
    %cst_20 = arith.constant 9.99999996E-13 : f32
    %cst_21 = arith.constant 9.99999995E+11 : f32
    %61 = vector.broadcast %cst_20 : f32 to vector<1x256xf32>
    %62 = arith.maximumf %61, %60 : vector<1x256xf32>
    %63 = vector.broadcast %cst_21 : f32 to vector<1x256xf32>
    %64 = arith.minimumf %63, %62 : vector<1x256xf32>
    %65 = arith.addf %49, %64 : vector<1x256xf32>
    %c4_i32 = arith.constant 4 : i32
    %66 = arith.addi %0, %c4_i32 : i32
    %67 = arith.index_cast %66 : i32 to index
    %68 = memref.load %arg1[%67] : memref<8xi32, #tpu.memory_space<smem>>
    %c0_i32_22 = arith.constant 0 : i32
    %c15_i32_23 = arith.constant 15 : i32
    %69 = arith.maxsi %c0_i32_22, %68 : i32
    %70 = arith.minsi %c15_i32_23, %69 : i32
    %71 = arith.index_cast %70 : i32 to index
    %c0_24 = arith.constant 0 : index
    %72 = vector.load %arg3[%71, %c0_24] : memref<16x256xf32, #tpu.memory_space<vmem>>, vector<1x256xf32>
    %73 = arith.index_cast %c4_i32 : i32 to index
    %c0_25 = arith.constant 0 : index
    %74 = vector.load %arg2[%73, %c0_25] : memref<8x256xf32, #tpu.memory_space<vmem>>, vector<1x256xf32>
    %75 = arith.subf %74, %72 : vector<1x256xf32>
    %76 = arith.mulf %75, %75 : vector<1x256xf32>
    %cst_26 = arith.constant 9.99999996E-13 : f32
    %cst_27 = arith.constant 9.99999995E+11 : f32
    %77 = vector.broadcast %cst_26 : f32 to vector<1x256xf32>
    %78 = arith.maximumf %77, %76 : vector<1x256xf32>
    %79 = vector.broadcast %cst_27 : f32 to vector<1x256xf32>
    %80 = arith.minimumf %79, %78 : vector<1x256xf32>
    %81 = arith.addf %65, %80 : vector<1x256xf32>
    %c5_i32 = arith.constant 5 : i32
    %82 = arith.addi %0, %c5_i32 : i32
    %83 = arith.index_cast %82 : i32 to index
    %84 = memref.load %arg1[%83] : memref<8xi32, #tpu.memory_space<smem>>
    %c0_i32_28 = arith.constant 0 : i32
    %c15_i32_29 = arith.constant 15 : i32
    %85 = arith.maxsi %c0_i32_28, %84 : i32
    %86 = arith.minsi %c15_i32_29, %85 : i32
    %87 = arith.index_cast %86 : i32 to index
    %c0_30 = arith.constant 0 : index
    %88 = vector.load %arg3[%87, %c0_30] : memref<16x256xf32, #tpu.memory_space<vmem>>, vector<1x256xf32>
    %89 = arith.index_cast %c5_i32 : i32 to index
    %c0_31 = arith.constant 0 : index
    %90 = vector.load %arg2[%89, %c0_31] : memref<8x256xf32, #tpu.memory_space<vmem>>, vector<1x256xf32>
    %91 = arith.subf %90, %88 : vector<1x256xf32>
    %92 = arith.mulf %91, %91 : vector<1x256xf32>
    %cst_32 = arith.constant 9.99999996E-13 : f32
    %cst_33 = arith.constant 9.99999995E+11 : f32
    %93 = vector.broadcast %cst_32 : f32 to vector<1x256xf32>
    %94 = arith.maximumf %93, %92 : vector<1x256xf32>
    %95 = vector.broadcast %cst_33 : f32 to vector<1x256xf32>
    %96 = arith.minimumf %95, %94 : vector<1x256xf32>
    %97 = arith.addf %81, %96 : vector<1x256xf32>
    %c6_i32 = arith.constant 6 : i32
    %98 = arith.addi %0, %c6_i32 : i32
    %99 = arith.index_cast %98 : i32 to index
    %100 = memref.load %arg1[%99] : memref<8xi32, #tpu.memory_space<smem>>
    %c0_i32_34 = arith.constant 0 : i32
    %c15_i32_35 = arith.constant 15 : i32
    %101 = arith.maxsi %c0_i32_34, %100 : i32
    %102 = arith.minsi %c15_i32_35, %101 : i32
    %103 = arith.index_cast %102 : i32 to index
    %c0_36 = arith.constant 0 : index
    %104 = vector.load %arg3[%103, %c0_36] : memref<16x256xf32, #tpu.memory_space<vmem>>, vector<1x256xf32>
    %105 = arith.index_cast %c6_i32 : i32 to index
    %c0_37 = arith.constant 0 : index
    %106 = vector.load %arg2[%105, %c0_37] : memref<8x256xf32, #tpu.memory_space<vmem>>, vector<1x256xf32>
    %107 = arith.subf %106, %104 : vector<1x256xf32>
    %108 = arith.mulf %107, %107 : vector<1x256xf32>
    %cst_38 = arith.constant 9.99999996E-13 : f32
    %cst_39 = arith.constant 9.99999995E+11 : f32
    %109 = vector.broadcast %cst_38 : f32 to vector<1x256xf32>
    %110 = arith.maximumf %109, %108 : vector<1x256xf32>
    %111 = vector.broadcast %cst_39 : f32 to vector<1x256xf32>
    %112 = arith.minimumf %111, %110 : vector<1x256xf32>
    %113 = arith.addf %97, %112 : vector<1x256xf32>
    %c7_i32 = arith.constant 7 : i32
    %114 = arith.addi %0, %c7_i32 : i32
    %115 = arith.index_cast %114 : i32 to index
    %116 = memref.load %arg1[%115] : memref<8xi32, #tpu.memory_space<smem>>
    %c0_i32_40 = arith.constant 0 : i32
    %c15_i32_41 = arith.constant 15 : i32
    %117 = arith.maxsi %c0_i32_40, %116 : i32
    %118 = arith.minsi %c15_i32_41, %117 : i32
    %119 = arith.index_cast %118 : i32 to index
    %c0_42 = arith.constant 0 : index
    %120 = vector.load %arg3[%119, %c0_42] : memref<16x256xf32, #tpu.memory_space<vmem>>, vector<1x256xf32>
    %121 = arith.index_cast %c7_i32 : i32 to index
    %c0_43 = arith.constant 0 : index
    %122 = vector.load %arg2[%121, %c0_43] : memref<8x256xf32, #tpu.memory_space<vmem>>, vector<1x256xf32>
    %123 = arith.subf %122, %120 : vector<1x256xf32>
    %124 = arith.mulf %123, %123 : vector<1x256xf32>
    %cst_44 = arith.constant 9.99999996E-13 : f32
    %cst_45 = arith.constant 9.99999995E+11 : f32
    %125 = vector.broadcast %cst_44 : f32 to vector<1x256xf32>
    %126 = arith.maximumf %125, %124 : vector<1x256xf32>
    %127 = vector.broadcast %cst_45 : f32 to vector<1x256xf32>
    %128 = arith.minimumf %127, %126 : vector<1x256xf32>
    %129 = arith.addf %113, %128 : vector<1x256xf32>
    %c8_i32_46 = arith.constant 8 : i32
    %c0_47 = arith.constant 0 : index
    %c0_48 = arith.constant 0 : index
    %130 = vector.load %arg4[%c0_47, %c0_48] : memref<1x256xf32, #tpu.memory_space<vmem>>, vector<1x256xf32>
    tpu.vector_store %arg4[%c0_47, %c0_48], %129 {strides = array<i32>} : memref<1x256xf32, #tpu.memory_space<vmem>>, vector<1x256xf32>,
    return
  }
  func.func @transform_0(%arg0: i32, %arg1: memref<8xi32, #tpu.memory_space<smem>>) -> (i32, i32) {
    %c0_i32 = arith.constant 0 : i32
    %c0_i32_0 = arith.constant 0 : i32
    return %arg0, %c0_i32 : i32, i32
  }
  func.func @transform_1(%arg0: i32, %arg1: memref<8xi32, #tpu.memory_space<smem>>) -> (i32, i32) {
    %c0_i32 = arith.constant 0 : i32
    %c0_i32_0 = arith.constant 0 : i32
    %c0_i32_1 = arith.constant 0 : i32
    return %c0_i32, %c0_i32_0 : i32, i32
  }
  func.func @transform_2(%arg0: i32, %arg1: memref<8xi32, #tpu.memory_space<smem>>) -> (i32, i32) {
    %c0_i32 = arith.constant 0 : i32
    %c0_i32_0 = arith.constant 0 : i32
    return %arg0, %c0_i32 : i32, i32
  }
}

</mosaic_0001>

<bundles_post_ra>
// kernel: center_loss.1
= control target key start
LH: loop header
LB: loop body
LE: loop exit
PB: predicated region body
PF: predicated region fallthrough
CT: control target
= control target key end

     0   :  { %s505_s0 = inlined_call_operand.vmem [shape: s32[8], index: 0, kind: input, shape index: {}]   ;;  %s506_s1 = inlined_call_operand.hbm [shape: f32[8,256], index: 1, kind: input, shape index: {}]   ;;  %s507_s2 = inlined_call_operand.hbm [shape: f32[16,256], index: 2, kind: input, shape index: {}]   ;;  %s508_s3 = inlined_call_operand.vmem [shape: f32[1,256], index: 3, kind: output, shape index: {}]  }
   0x1   :  { %s8_s14 = sshll.u32 %s505_s0, 4  ;;  %s9_s14 = int_to_ptr.vmem [resolvable:$true] %s8_s14 }
   0x2   :  { %s346_s15 = scalar_lea.vmem %s9_s14, 16  ;;  %p351_p1 = scmp.lt.s32.totalorder %s9_s14, %s9_s14 }
   0x3   :  { %p347_p0 = scmp.ne.s32.totalorder %s9_s14, %s346_s15  ;;  %p352_p2 = scmp.lt.s32.totalorder %s346_s15, %s346_s15 }
   0x5   :  { %p353_p3 = por %p352_p2, %p351_p1 }
   0x7   :  { %p354_p4 = pnand %p353_p3, %p347_p0 }
   0x9   :  { %357 = shalt.err (!%p354_p4)  }
   0xa   :  { %s408_s16 = smov [#allocation3]  }
   0xb   :  { %11 = dma.vmem_to_smem %s9_s14, 16, %s408_s16, [#allocation2] }
   0xc   :  { %402 = dma.done.wait [#allocation2], 16 }
   0xd   :  { %403 = vsyncadd [#allocation2], 4294967280 }
   0xe   :  { %13 = sfence }
   0xf   :  { %14 = vsyncpa [#allocation5], 0 }
  0x10   :  { %15 = vsyncpa [#allocation7], 0  ;;  %s409_s17 = smov [#allocation4]   ;;  %s410_s19 = smov [#allocation6]  }
  0x11   :  { %s22_s18 = sshll.u32 %s409_s17, 4  ;;  %s31_s20 = sshll.u32 %s410_s19, 4  ;;  %s23_s18 = int_to_ptr.vmem [resolvable:$true] %s22_s18  ;;  %s436_s20 = int_to_ptr.vmem [resolvable:$true] %s31_s20 }
  0x12   :  { %s358_s22 = scalar_lea.hbm %s506_s1, 256 }
  0x13   :  { %p359_p5 = scmp.ne.s32.totalorder %s506_s1, %s358_s22  ;;  %p362_p6 = scmp.lt.u32.totalorder %s358_s22, %s506_s1 }
  0x15   :  { %p364_p7 = pnand %p362_p6, %p359_p5 }
  0x17   :  { %367 = shalt.err (!%p364_p7)
}
  0x18   :  { %s368_s27 = scalar_lea.vmem %s23_s18, 256  ;;  %p373_p9 = scmp.lt.s32.totalorder %s23_s18, %s23_s18 }
  0x19   :  { %p369_p8 = scmp.ne.s32.totalorder %s23_s18, %s368_s27  ;;  %p374_p10 = scmp.lt.s32.totalorder %s368_s27, %s368_s27 }
  0x1b   :  { %p375_p11 = por %p374_p10, %p373_p9 }
  0x1d   :  { %p376_p12 = pnand %p375_p11, %p369_p8 }
  0x1f   :  { %379 = shalt.err (!%p376_p12)
}
  0x20   :  { %25 = dma.hbm_to_vmem [thread:$0]  %s506_s1, 256, %s23_s18, [#allocation5]  }
  0x21   :  { %s380_s5 = scalar_lea.hbm %s507_s2, 512 }
  0x22   :  { %p381_p13 = scmp.ne.s32.totalorder %s507_s2, %s380_s5  ;;  %p384_p0 = scmp.lt.u32.totalorder %s380_s5, %s507_s2 }
  0x24   :  { %p386_p1 = pnand %p384_p0, %p381_p13 }
  0x26   :  { %389 = shalt.err (!%p386_p1)
}
  0x27   :  { %s390_s10 = scalar_lea.vmem %s436_s20, 512  ;;  %p395_p3 = scmp.lt.s32.totalorder %s436_s20, %s436_s20 }
  0x28   :  { %p391_p2 = scmp.ne.s32.totalorder %s436_s20, %s390_s10  ;;  %p396_p4 = scmp.lt.s32.totalorder %s390_s10, %s390_s10 }
  0x2a   :  { %p397_p5 = por %p396_p4, %p395_p3 }
  0x2c   :  { %p398_p6 = pnand %p397_p5, %p391_p2 }
  0x2e   :  { %401 = shalt.err (!%p398_p6)
}
  0x2f   :  { %s411_s1 = smov 256   ;;  %s412_s11 = smov 16  }
  0x30   :  { %37 = dma.hbm_to_vmem [thread:$0]  %s507_s2, 512, %s436_s20, [#allocation7], %s411_s1, %s411_s1, %s412_s11  }
  0x31   :  { %404 = dma.done.wait [#allocation5], 256  }
  0x32   :  { %405 = vsyncadd [#allocation5], 4294967040 }
  0x33   :  { %406 = dma.done.wait [#allocation7], 512  }
  0x34   :  { %407 = vsyncadd [#allocation7], 4294966784  ;;  %s45_s14 = sld [smem:[#allocation3]]  ;;  %s261_s15 = sld [smem:[#allocation3 + $0x1]]  ;;  %v219_v51 = vlaneseq }
  0x35   :  { %s269_s16 = sld [smem:[#allocation3 + $0x2]]  ;;  %s467_s17 = sld [smem:[#allocation3 + $0x3]]  ;;  %v59_v0 = vld [vmem:[#allocation4] ss:$8 sm:$0x3] }
  0x36   :  { %s469_s18 = sld [smem:[#allocation3 + $0x4]]  ;;  %s471_s19 = sld [smem:[#allocation3 + $0x5]]  ;;  %v81_v1 = vld [vmem:[#allocation4 + $0x1] ss:$8 sm:$0x3]  ;;  %vm221_vm0 = vcmp.lt.s32.totalorder %v219_v51, 256 }
  0x37   :  { %s477_s6 = sld [smem:[#allocation3 + $0x6]]  ;;  %v103_v6 = vld [vmem:[#allocation4 + $0x2] ss:$8 sm:$0x3]  ;;  %s484_s12 = sld [smem:[#allocation3 + $0x7]] }
  0x38   :  { %v125_v11 = vld [vmem:[#allocation4 + $0x3] ss:$8 sm:$0x3]  ;;  %v147_v18 = vld [vmem:[#allocation4 + $0x4] ss:$8 sm:$0x3] }
  0x39   :  { %v169_v28 = vld [vmem:[#allocation4 + $0x5] ss:$8 sm:$0x3]  ;;  %v191_v35 = vld [vmem:[#allocation4 + $0x6] ss:$8 sm:$0x3] }
  0x3a   :  { %p46_p7 = scmp.gt.s32.totalorder %s45_s14, 0  ;;  %p254_p8 = scmp.lt.s32.totalorder %s45_s14, 15  ;;  %v213_v44 = vld [vmem:[#allocation4 + $0x7] ss:$8 sm:$0x3] }
  0x3b   :  { %p67_p9 = scmp.gt.s32.totalorder %s261_s15, 0  ;;  %p262_p10 = scmp.lt.s32.totalorder %s261_s15, 15 }
  0x3c   :  { %s510_s14 = smov (!%p46_p7, %s45_s14), 0  ;;  %p89_p11 = scmp.gt.s32.totalorder %s269_s16, 0 }
  0x3d   :  { %s512_s15 = smov (!%p67_p9, %s261_s15), 0  ;;  %s514_s14 = smov (!%p254_p8, %s510_s14), 15 }
  0x3e   :  { %s516_s15 = smov (!%p262_p10, %s512_s15), 15  ;;  %s50_s2 = sshra.s32 %s514_s14, 3 }
  0x3f   :  { %s53_s20 = sand.u32 7, %s514_s14  ;;  %s319_s0 = sshll.u32 %s50_s2, 4 }
  0x40   :  { %s71_s21 = sshra.s32 %s516_s15, 3  ;;  %s56_s22 = sadd.s32 %s319_s0, %s53_s20 }
  0x41   :  { %s74_s23 = sand.u32 7, %s516_s15  ;;  %s322_s24 = sshll.u32 %s71_s21, 4 }
  0x42   :  { %s77_s25 = sadd.s32 %s322_s24, %s74_s23  ;;  %p270_p12 = scmp.lt.s32.totalorder %s269_s16, 15 }
  0x43   :  { %s518_s16 = smov (!%p89_p11, %s269_s16), 0  ;;  %p111_p13 = scmp.gt.s32.totalorder %s467_s17, 0 }
  0x44   :  { %p278_p0 = scmp.lt.s32.totalorder %s467_s17, 15  ;;  %s520_s16 = smov (!%p270_p12, %s518_s16), 15 }
  0x45   :  { %s57_s26 = scalar_lea.vmem [#allocation6], %s56_s22  ;;  %s78_s28 = scalar_lea.vmem [#allocation6], %s77_s25 }
  0x46   :  { %v58_v2 = vld [vmem:[%s57_s26] ss:$8 sm:$0x3]  ;;  %s112_s27 = scalar_select %p111_p13, %s467_s17, 0 }
  0x47   :  { %v79_v3 = vld [vmem:[%s78_s28] ss:$8 sm:$0x3]  ;;  %s93_s29 = sshra.s32 %s520_s16, 3  ;;  %s96_s30 = sand.u32 7, %s520_s16  ;;  %v60_v4 = vsub.f32 %v59_v0, %v58_v2 }
  0x48   :  { %s325_s4 = sshll.u32 %s93_s29, 4  ;;  %p133_p1 = scmp.gt.s32.totalorder %s469_s18, 0  ;;  %v82_v5 = vsub.f32 %v81_v1, %v79_v3 }
  0x49   :  { %s99_s5 = sadd.s32 %s325_s4, %s96_s30  ;;  %p286_p2 = scmp.lt.s32.totalorder %s469_s18, 15  ;;  %v61_v8 = vmul.f32 %v60_v4, %v60_v4 }
  0x4a   :  { %s100_s7 = scalar_lea.vmem [#allocation6], %s99_s5  ;;  %s522_s27 = smov (!%p278_p0, %s112_s27), 15  ;;  %v83_v9 = vmul.f32 %v82_v5, %v82_v5 }
  0x4b   :  { %v101_v7 = vld [vmem:[%s100_s7] ss:$8 sm:$0x3]  ;;  %s134_s8 = scalar_select %p133_p1, %s469_s18, 0  ;;  %v62_v12 = vmax.f32 %v61_v8, 1e-12 }
  0x4c   :  { %s115_s9 = sshra.s32 %s522_s27, 3  ;;  %s118_s10 = sand.u32 7, %s522_s27  ;;  %v104_v10 = vsub.f32 %v103_v6, %v101_v7  ;;  %v84_v14 = vmax.f32 %v83_v9, 1e-12 }
  0x4d   :  { %s328_s1 = sshll.u32 %s115_s9, 4  ;;  %p155_p3 = scmp.gt.s32.totalorder %s471_s19, 0  ;;  %v63_v17 = vmin.f32 %v62_v12, 1e+12 }
  0x4e   :  { %s121_s11 = sadd.s32 %s328_s1, %s118_s10  ;;  %p294_p4 = scmp.lt.s32.totalorder %s471_s19, 15  ;;  %v105_v15 = vmul.f32 %v104_v10, %v104_v10  ;;  %v85_v19 = vmin.f32 %v84_v14, 1e+12 }
  0x4f   :  { %s122_s13 = scalar_lea.vmem [#allocation6], %s121_s11  ;;  %s524_s8 = smov (!%p286_p2, %s134_s8), 15 }
  0x50   :  { %v123_v13 = vld [vmem:[%s122_s13] ss:$8 sm:$0x3]  ;;  %s156_s14 = scalar_select %p155_p3, %s471_s19, 0  ;;  %v106_v20 = vmax.f32 %v105_v15, 1e-12  ;;  %v86_v24 = vadd.f32 %v85_v19, %v63_v17 }
  0x51   :  { %v126_v16 = vsub.f32 %v125_v11, %v123_v13  ;;  %s137_s15 = sshra.s32 %s524_s8, 3  ;;  %s140_s16 = sand.u32 7, %s524_s8 }
  0x52   :  { %s331_s17 = sshll.u32 %s137_s15, 4  ;;  %p177_p5 = scmp.gt.s32.totalorder %s477_s6, 0  ;;  %v107_v25 = vmin.f32 %v106_v20, 1e+12 }
  0x53   :  { %s143_s2 = sadd.s32 %s331_s17, %s140_s16  ;;  %v127_v21 = vmul.f32 %v126_v16, %v126_v16  ;;  %p302_p6 = scmp.lt.s32.totalorder %s477_s6, 15 }
  0x54   :  { %s144_s18 = scalar_lea.vmem [#allocation6], %s143_s2  ;;  %s526_s14 = smov (!%p294_p4, %s156_s14), 15  ;;  %v108_v30 = vadd.f32 %v107_v25, %v86_v24 }
  0x55   :  { %v145_v22 = vld [vmem:[%s144_s18] ss:$8 sm:$0x3]  ;;  %s178_s20 = scalar_select %p177_p5, %s477_s6, 0  ;;  %v128_v26 = vmax.f32 %v127_v21, 1e-12 }
  0x56   :  { %v148_v23 = vsub.f32 %v147_v18, %v145_v22  ;;  %s159_s0 = sshra.s32 %s526_s14, 3  ;;  %s162_s21 = sand.u32 7, %s526_s14 }
  0x57   :  { %s334_s22 = sshll.u32 %s159_s0, 4  ;;  %p199_p7 = scmp.gt.s32.totalorder %s484_s12, 0  ;;  %v129_v31 = vmin.f32 %v128_v26, 1e+12 }
  0x58   :  { %v149_v27 = vmul.f32 %v148_v23, %v148_v23  ;;  %s165_s23 = sadd.s32 %s334_s22, %s162_s21  ;;  %p310_p8 = scmp.lt.s32.totalorder %s484_s12, 15 }
  0x59   :  { %s166_s24 = scalar_lea.vmem [#allocation6], %s165_s23  ;;  %s528_s20 = smov (!%p302_p6, %s178_s20), 15  ;;  %v130_v36 = vadd.f32 %v129_v31, %v108_v30 }
  0x5a   :  { %v167_v29 = vld [vmem:[%s166_s24] ss:$8 sm:$0x3]  ;;  %v150_v32 = vmax.f32 %v149_v27, 1e-12  ;;  %s200_s19 = scalar_select %p199_p7, %s484_s12, 0 }
  0x5b   :  { %v170_v33 = vsub.f32 %v169_v28, %v167_v29  ;;  %s181_s25 = sshra.s32 %s528_s20, 3  ;;  %s184_s26 = sand.u32 7, %s528_s20 }
  0x5c   :  { %s337_s27 = sshll.u32 %s181_s25, 4  ;;  %v151_v37 = vmin.f32 %v150_v32, 1e+12  ;;  %s530_s19 = smov (!%p310_p8, %s200_s19), 15 }
  0x5d   :  { %v171_v34 = vmul.f32 %v170_v33, %v170_v33  ;;  %s187_s28 = sadd.s32 %s337_s27, %s184_s26  ;;  %s203_s30 = sshra.s32 %s530_s19, 3 }
  0x5e   :  { %s188_s29 = scalar_lea.vmem [#allocation6], %s187_s28  ;;  %s206_s4 = sand.u32 7, %s530_s19  ;;  %v152_v41 = vadd.f32 %v151_v37, %v130_v36 }
  0x5f   :  { %v172_v38 = vmax.f32 %v171_v34, 1e-12  ;;  %v189_v39 = vld [vmem:[%s188_s29] ss:$8 sm:$0x3]  ;;  %s340_s5 = sshll.u32 %s203_s30, 4 }
  0x60   :  { %v192_v40 = vsub.f32 %v191_v35, %v189_v39  ;;  %s209_s6 = sadd.s32 %s340_s5, %s206_s4 }
  0x61   :  { %v173_v42 = vmin.f32 %v172_v38, 1e+12  ;;  %s210_s7 = scalar_lea.vmem [#allocation6], %s209_s6 }
  0x62   :  { %v193_v43 = vmul.f32 %v192_v40, %v192_v40  ;;  %v211_v46 = vld [vmem:[%s210_s7] ss:$8 sm:$0x3] }
  0x63   :  { %v174_v47 = vadd.f32 %v173_v42, %v152_v41  ;;  %v214_v49 = vsub.f32 %v213_v44, %v211_v46 }
  0x64   :  { %v194_v45 = vmax.f32 %v193_v43, 1e-12 }
  0x65   :  { %v215_v50 = vmul.f32 %v214_v49, %v214_v49 }
  0x66   :  { %v195_v48 = vmin.f32 %v194_v45, 1e+12 }
  0x67   :  { %v216_v53 = vmax.f32 %v215_v50, 1e-12 }
  0x68   :  { %v196_v52 = vadd.f32 %v195_v48, %v174_v47 }
  0x69   :  { %v217_v54 = vmin.f32 %v216_v53, 1e+12 }
  0x6b   :  { %v218_v55 = vadd.f32 %v217_v54, %v196_v52 }
  0x6d   :  { %223 = vst.msk [vmem:[%s508_s3] sm:$0x3] %vm221_vm0, %v218_v55 }
  0x6e   :  { %228 = vsyncpa [#allocation5], 1 }
  0x6f   :  { %229 = vsyncpa [#allocation7], 1 }

</bundles_post_ra>
